<compile_context>
chip_gen: v6e
topology: v6e:2x2x1
jax: 0.10.0
libtpu: 0.0.40
codegen_flags: <defaults>
</compile_context>

<pallas_src>
import functools

import jax
import jax.numpy as jnp
import numpy as np
from jax import lax
from jax.experimental import pallas as pl
from jax.experimental.pallas import tpu as pltpu


def _round_up(x, m):
    return (x + m - 1) // m * m


# ----------------------------- Pallas kernel --------------------------------

def _temporal_block_kernel(im_ref, w_ref, b_ref, o_ref, *, c_out):
    # im_ref: ((K+1)*C_in, col_tile)   im2col column tile (lane-dense)
    # w_ref : (3*C_out, (K+1)*C_in)    stacked rows [conv1 | conv2 | downsample]
    # b_ref : (3*C_out, 1)             stacked biases (f32)
    # o_ref : (C_out, col_tile)        channel-major output tile
    acc = jnp.dot(w_ref[...], im_ref[...],
                  preferred_element_type=jnp.float32) + b_ref[...]
    out1 = jnp.tanh(acc[0:c_out])                  # dropout1 = identity (eval)
    out2 = jax.nn.sigmoid(acc[c_out:2 * c_out])    # dropout2 = identity (eval)
    res = acc[2 * c_out:]                          # 1x1 downsample residual
    o_ref[...] = jnp.maximum(out1 * out2 + res, 0.0).astype(o_ref.dtype)


# -------------------- one-time parameter packing (module init) ----------------

def pack_temporal_block_params(w1, b1, w2, b2, wd, bd):
    """Pack conv1/conv2/downsample into one stacked matmul operand.

    Call ONCE (weights are static in eval); the per-call forward only consumes
    the packed arrays.  Returns:
      w_big: (3*C_out, (K+1)*C_in)  rows [conv1 | conv2 | downsample],
                                    cols [tap0..tapK-1 | center], each C_in wide
      b_big: (3*C_out, 1)
    """
    c_out, c_in, k = w1.shape

    def flat_taps(w):            # (C_out, C_in, K) -> (C_out, K*C_in); col = tap*C_in + c
        return jnp.transpose(w, (0, 2, 1)).reshape(c_out, k * c_in)

    zeros_tap = jnp.zeros((c_out, c_in), w1.dtype)
    zeros_kc = jnp.zeros((c_out, k * c_in), w1.dtype)
    w_big = jnp.concatenate([
        jnp.concatenate([flat_taps(w1), zeros_tap], axis=1),
        jnp.concatenate([flat_taps(w2), zeros_tap], axis=1),
        jnp.concatenate([zeros_kc, wd[:, :, 0]], axis=1),
    ], axis=0).astype(jnp.float32)
    b_big = jnp.concatenate([b1, b2, bd]).reshape(3 * c_out, 1).astype(jnp.float32)
    return w_big, b_big


# ------------------------------ JAX wrapper ----------------------------------

@functools.partial(jax.jit, static_argnames=(
    "kernel_size", "stride", "dilation", "padding", "col_tile", "channel_major_out"))
def temporal_block(x, w_big, b_big, *, kernel_size, stride, dilation, padding,
                   col_tile=512, channel_major_out=False):
    """x: (N, C_in, L); w_big/b_big: packed by pack_temporal_block_params()."""
    assert stride == 1, "residual add requires L_out == L (stride 1)"
    n, c_in, length = x.shape
    k = kernel_size
    c_out = w_big.shape[0] // 3
    assert 2 * padding == dilation * (k - 1), \
        "residual add requires 'same' output length"
    assert w_big.shape == (3 * c_out, (k + 1) * c_in)

    # --- wrapper-side im2col, fused into the pad/transpose producer ----------
    # rows: K dilated taps of the padded input + center-aligned rows for the
    #       1x1 downsample; cols: batch-major, time-fast (b*L + t).
    x_pad = jnp.pad(x, ((0, 0), (0, 0), (padding, padding)))
    taps = [lax.dynamic_slice_in_dim(x_pad, t * dilation, length, axis=2)
            for t in range(k)]
    taps.append(x)                                  # center rows (downsample)
    im = jnp.stack(taps, axis=0)                    # (K+1, N, C_in, L)
    im = jnp.transpose(im, (0, 2, 1, 3)).reshape((k + 1) * c_in, n * length)

    # Lane-dense: pad the collapsed batch*time axis to a multiple of 128 so the
    # kernel's loads/stores are full-lane (pad columns are zeros, sliced later).
    ncols = n * length
    ncols_pad = _round_up(max(ncols, 128), 128)
    if ncols_pad != ncols:
        im = jnp.pad(im, ((0, 0), (0, ncols_pad - ncols)))
    im = im.astype(jnp.float32)

    # Column tile: multiple of 128 that divides ncols_pad; 'parallel' grid axis
    # so multi-tile cases shard across v7x's two TensorCores and auto-pipeline.
    ct = max(128, min(col_tile, ncols_pad) // 128 * 128)
    while ncols_pad % ct:
        ct -= 128
    grid = (ncols_pad // ct,)

    kernel = functools.partial(_temporal_block_kernel, c_out=c_out)
    out2d = pl.pallas_call(
        kernel,
        out_shape=jax.ShapeDtypeStruct((c_out, ncols_pad), x.dtype),
        grid=grid,
        in_specs=[
            pl.BlockSpec(((k + 1) * c_in, ct), lambda j: (0, j)),
            pl.BlockSpec((3 * c_out, (k + 1) * c_in), lambda j: (0, 0)),
            pl.BlockSpec((3 * c_out, 1), lambda j: (0, 0)),
        ],
        out_specs=pl.BlockSpec((c_out, ct), lambda j: (0, j)),
        compiler_params=pltpu.CompilerParams(dimension_semantics=("parallel",)),
    )(im, w_big, b_big)

    out2d = out2d[:, :ncols]                        # drop lane padding
    if channel_major_out:
        # Keep (C_out, N*L) across stacked TCN blocks: one layout change at the
        # stack boundary instead of an HBM transpose round trip per block.
        return out2d
    return jnp.transpose(out2d.reshape(c_out, n, length), (1, 0, 2))


# -------------------------- pure-JAX reference -------------------------------

def _conv1d(x, w, b, stride, dilation, padding):
    out = lax.conv_general_dilated(
        x, w, window_strides=(stride,), padding=[(padding, padding)],
        rhs_dilation=(dilation,), dimension_numbers=("NCH", "OIH", "NCH"))
    return out + b[None, :, None]


def reference_forward(x, w1, b1, w2, b2, wd, bd, *, stride, dilation, padding):
    out1 = jnp.tanh(_conv1d(x, w1, b1, stride, dilation, padding))
    out2 = jax.nn.sigmoid(_conv1d(x, w2, b2, stride, dilation, padding))
    res = _conv1d(x, wd, bd, 1, 1, 0)
    return jnp.maximum(out1 * out2 + res, 0.0)


# ------------------------------- main -----------------------------------------

def _weight_norm(v, g):
    # weight_norm over all dims except output-channel dim 0.
    norm = jnp.sqrt(jnp.sum(v * v, axis=(1, 2), keepdims=True))
    return g[:, None, None] * v / norm


if __name__ == "__main__":
    # Module hyper-params (chosen so L_out == L, as the residual add requires).
    N, C_IN, C_OUT, L = 2, 4, 8, 16
    K, STRIDE, DILATION, PADDING = 3, 1, 2, 2

    key = jax.random.PRNGKey(0)
    kx, kv1, kg1, kb1, kv2, kg2, kb2, kwd, kbd = jax.random.split(key, 9)

    x = jax.random.normal(kx, (N, C_IN, L), jnp.float32)

    # weight_norm parametrization: w = g * v / ||v||  (per output channel)
    v1 = 0.01 * jax.random.normal(kv1, (C_OUT, C_IN, K), jnp.float32)
    g1 = 0.05 + 0.01 * jax.random.uniform(kg1, (C_OUT,), jnp.float32)
    w1 = _weight_norm(v1, g1)
    b1 = 0.1 * jax.random.normal(kb1, (C_OUT,), jnp.float32)

    v2 = 0.01 * jax.random.normal(kv2, (C_OUT, C_IN, K), jnp.float32)
    g2 = 0.05 + 0.01 * jax.random.uniform(kg2, (C_OUT,), jnp.float32)
    w2 = _weight_norm(v2, g2)
    b2 = 0.1 * jax.random.normal(kb2, (C_OUT,), jnp.float32)

    # downsample 1x1 conv (present because C_IN != C_OUT)
    wd = 0.01 * jax.random.normal(kwd, (C_OUT, C_IN, 1), jnp.float32)
    bd = 0.1 * jax.random.normal(kbd, (C_OUT,), jnp.float32)

    # One-time packing (module init), hoisted out of the per-call hot path.
    w_big, b_big = pack_temporal_block_params(w1, b1, w2, b2, wd, bd)
    w_big, b_big = jax.block_until_ready((w_big, b_big))

    out = temporal_block(x, w_big, b_big,
                         kernel_size=K, stride=STRIDE,
                         dilation=DILATION, padding=PADDING)
    out = jax.block_until_ready(out)

    ref = reference_forward(x, w1, b1, w2, b2, wd, bd,
                            stride=STRIDE, dilation=DILATION, padding=PADDING)
    np.testing.assert_allclose(np.asarray(out), np.asarray(ref), atol=1e-4, rtol=1e-4)

    print("KERNEL_OK")
</pallas_src>

<mosaic_0001>
module attributes {stable_mosaic.version = 11 : i64} {
  func.func @_temporal_block_kernel(%arg0: i32, %arg1: memref<16x128xf32, #tpu.memory_space<vmem>>, %arg2: memref<24x16xf32, #tpu.memory_space<vmem>>, %arg3: memref<24x1xf32, #tpu.memory_space<vmem>>, %arg4: memref<8x128xf32, #tpu.memory_space<vmem>>) attributes {dimension_semantics = [#tpu.dimension_semantics<parallel>], iteration_bounds = array<i64: 1>, scalar_prefetch = 0 : i64, scratch_operands = 0 : i64, tpu.core_type = #tpu.core_type<tc>, window_params = [{transform_indices = @transform_0, window_bounds = array<i64: 16, 128>}, {pipeline_mode = #tpu.pipeline_mode<synchronous>, transform_indices = @transform_1, window_bounds = array<i64: 24, 16>}, {pipeline_mode = #tpu.pipeline_mode<synchronous>, transform_indices = @transform_2, window_bounds = array<i64: 24, 1>}, {transform_indices = @transform_3, window_bounds = array<i64: 8, 128>}]} {
    %c0 = arith.constant 0 : index
    %c0_0 = arith.constant 0 : index
    %0 = vector.load %arg2[%c0, %c0_0] : memref<24x16xf32, #tpu.memory_space<vmem>>, vector<24x16xf32>
    %c0_1 = arith.constant 0 : index
    %c0_2 = arith.constant 0 : index
    %1 = vector.load %arg1[%c0_1, %c0_2] : memref<16x128xf32, #tpu.memory_space<vmem>>, vector<16x128xf32>
    %cst = arith.constant dense<0.000000e+00> : vector<24x128xf32>
    %2 = tpu.matmul %0, %1, %cst {dimension_numbers = #tpu.dot_dimension_numbers<[1], [0], [0], [1], [0, 0, 1, 1], [], []>} : vector<24x16xf32>, vector<16x128xf32>, vector<24x128xf32> -> vector<24x128xf32>
    %c0_3 = arith.constant 0 : index
    %c0_4 = arith.constant 0 : index
    %3 = vector.load %arg3[%c0_3, %c0_4] : memref<24x1xf32, #tpu.memory_space<vmem>>, vector<24x1xf32>
    %4 = vector.broadcast %3 : vector<24x1xf32> to vector<24x128xf32>
    %5 = arith.addf %2, %4 : vector<24x128xf32>
    %6 = vector.extract_strided_slice %5 {offsets = [0, 0], sizes = [8, 128], strides = [1, 1]} : vector<24x128xf32> to vector<8x128xf32>
    %7 = math.tanh %6 : vector<8x128xf32>
    %8 = vector.extract_strided_slice %5 {offsets = [8, 0], sizes = [8, 128], strides = [1, 1]} : vector<24x128xf32> to vector<8x128xf32>
    %9 = arith.negf %8 : vector<8x128xf32>
    %10 = math.exp %9 : vector<8x128xf32>
    %cst_5 = arith.constant 1.000000e+00 : f32
    %11 = vector.broadcast %cst_5 : f32 to vector<8x128xf32>
    %12 = arith.addf %11, %10 : vector<8x128xf32>
    %13 = arith.divf %11, %12 : vector<8x128xf32>
    %14 = vector.extract_strided_slice %5 {offsets = [16, 0], sizes = [8, 128], strides = [1, 1]} : vector<24x128xf32> to vector<8x128xf32>
    %15 = arith.mulf %7, %13 : vector<8x128xf32>
    %16 = arith.addf %15, %14 : vector<8x128xf32>
    %cst_6 = arith.constant 0.000000e+00 : f32
    %17 = vector.broadcast %cst_6 : f32 to vector<8x128xf32>
    %18 = arith.maximumf %16, %17 : vector<8x128xf32>
    %c0_7 = arith.constant 0 : index
    %c0_8 = arith.constant 0 : index
    %19 = vector.load %arg4[%c0_7, %c0_8] : memref<8x128xf32, #tpu.memory_space<vmem>>, vector<8x128xf32>
    tpu.vector_store %arg4[%c0_7, %c0_8], %18 {strides = array<i32>} : memref<8x128xf32, #tpu.memory_space<vmem>>, vector<8x128xf32>,
    return
  }
  func.func @transform_0(%arg0: i32) -> (i32, i32) {
    %c0_i32 = arith.constant 0 : i32
    %c0_i32_0 = arith.constant 0 : i32
    return %c0_i32, %arg0 : i32, i32
  }
  func.func @transform_1(%arg0: i32) -> (i32, i32) {
    %c0_i32 = arith.constant 0 : i32
    %c0_i32_0 = arith.constant 0 : i32
    %c0_i32_1 = arith.constant 0 : i32
    return %c0_i32, %c0_i32_0 : i32, i32
  }
  func.func @transform_2(%arg0: i32) -> (i32, i32) {
    %c0_i32 = arith.constant 0 : i32
    %c0_i32_0 = arith.constant 0 : i32
    %c0_i32_1 = arith.constant 0 : i32
    return %c0_i32, %c0_i32_0 : i32, i32
  }
  func.func @transform_3(%arg0: i32) -> (i32, i32) {
    %c0_i32 = arith.constant 0 : i32
    %c0_i32_0 = arith.constant 0 : i32
    return %c0_i32, %arg0 : i32, i32
  }
}

</mosaic_0001>

<bundles_post_ra>
// kernel: temporal_block.1
= control target key start
LH: loop header
LB: loop body
LE: loop exit
PB: predicated region body
PF: predicated region fallthrough
CT: control target
= control target key end

     0   :  { %v179_v0 = vmov 0.0   ;;  %vm37_vm0 = vcmask 130048   ;;  %vm180_vm1 = vmmov 0   ;;  %v181_v8 = vmov 0   ;;  %s232_s0 = inlined_call_operand.vmem [shape: f32[16,128], index: 0, kind: input, shape index: {}]   ;;  %s233_s1 = inlined_call_operand.vmem [shape: f32[24,16], index: 1, kind: input, shape index: {}]   ;;  %s234_s2 = inlined_call_operand.vmem [shape: f32[24,1], index: 2, kind: input, shape index: {}]   ;;  %s235_s3 = inlined_call_operand.vmem [shape: f32[8,128], index: 3, kind: output, shape index: {}]  }
   0x1   :  { %151 = vmatprep.subr.mxu0 %v179_v0  ;;  %164 = vmatprep.subr.mxu1 %v179_v0  ;;  %v18_v1 = vld [vmem:[%s232_s0 + $0x8] sm:$0xff]  ;;  %v17_v2 = vld [vmem:[%s232_s0] sm:$0xff]  ;;  %v21_v6 = vld [vmem:[%s234_s2 + $0x10] sm:$0xff] }
   0x2   :  { %152 = vmatpush3.msra.mxu0 %v18_v1  ;;  %166 = vmatpush3.msra.mxu1 %v18_v1  ;;  %v14_v3 = vld [vmem:[%s233_s1] sm:$0xff]  ;;  %v15_v4 = vld [vmem:[%s233_s1 + $0x8] sm:$0xff]  ;;  %v16_v7 = vld [vmem:[%s233_s1 + $0x10] sm:$0xff] }
   0x3   :  { %153 = vmatprep.subr.mxu0 %v179_v0  ;;  %165 = vmatprep.subr.mxu1 %v179_v0  ;;  %v20_v5 = vld [vmem:[%s234_s2 + $0x8] sm:$0xff]  ;;  %v19_v9 = vld [vmem:[%s234_s2] sm:$0xff] }
   0x4   :  { %154 = vmatpush3.msra.mxu0 %v17_v2  ;;  %167 = vmatpush3.msra.mxu1 %v17_v2 }
   0x5   :  { %155 = vmatprep.mubr.msk.f32.mxu0 %vm180_vm1, %v179_v0  ;;  %158 = vmatprep.mubr.msk.f32.mxu1 %vm180_vm1, %v179_v0 }
   0x6   :  { %156 = vmatmul.mubr.msk.f32.vlgmr.msra.gmra.mxu0 %vm37_vm0, %v14_v3  ;;  %159 = vmatmul.mubr.msk.f32.vlgmr.msra.gmra.mxu1 %vm37_vm0, %v15_v4 }
   0x7   :  { %161 = vmatprep.mubr.msk.f32.mxu1 %vm180_vm1, %v179_v0  ;;  %171 = vset.pattern.permute.xlu0 %v181_v8 }
   0x8   :  { %29 = vperm.xlu0 %171, %v20_v5   ;;  %172 = vset.pattern.permute.xlu1 %v181_v8 }
   0x9   :  { %34 = vperm.xlu1 %172, %v21_v6  }
   0xa   :  { %162 = vmatmul.mubr.msk.f32.gmra.mxu1 %vm37_vm0, %v16_v7 }
   0xc   :  { %24 = vperm.xlu0 %171, %v19_v9  }
  0x83   :  { %v30_v10 = vpop.permute.xlu0 %29 }
  0x84   :  { %v35_v23 = vpop.permute.xlu1 %34 }
  0x87   :  { %v25_v19 = vpop.permute.xlu0 %24 }
  0xc6   :  { %v113_v11 = vpop.f32.mrf.mxu0  ;;  %v118_v12 = vpop.f32.mrf.mxu1 }
  0xc7   :  { %v119_v13 = vadd.f32 %v118_v12, %v30_v10  ;;  %v114_v20 = vadd.f32 %v113_v11, %v25_v19 }
  0xc8   :  { %v160_v14 = vpop.f32.mrf.mxu1  ;;  %v157_v15 = vpop.f32.mrf.mxu0 }
  0xc9   :  { %v145_v16 = vmul.f32 -1.442695, %v119_v13 }
  0xca   :  { %v123_v17 = vpop.f32.mrf.mxu1 }
  0xcb   :  { %173 = vpow2.f32 %v145_v16  ;;  %v124_v25 = vadd.f32 %v123_v17, %v35_v23 }
  0xcc   :  { %v163_v18 = vpop.f32.mrf.mxu1  ;;  %175 = vtanh.f32 %v114_v20 }
  0xd8   :  { %v174_v21 = vpop.eup %173 }
  0xd9   :  { %v131_v22 = vadd.f32 1.0, %v174_v21  ;;  %v176_v24 = vpop.eup %175 }
  0xdb   :  { %177 = vrcp.f32 %v131_v22 }
  0xe8   :  { %v178_v26 = vpop.eup %177 }
  0xe9   :  { %v134_v27 = vmul.f32 %v178_v26, %v176_v24 }
  0xeb   :  { %v135_v28 = vadd.f32 %v134_v27, %v124_v25 }
  0xed   :  { %v136_v29 = vmax.f32 %v135_v28, 0.0 }
  0xef   :  { %137 = vst [vmem:[%s235_s3] sm:$0xff] %v136_v29 }

</bundles_post_ra>
